<compile_context>
chip_gen: v7x
topology: tpu7x:2x2x1
jax: 0.10.0
libtpu: 0.0.40
codegen_flags: <defaults>
</compile_context>

<pallas_src>
import math

import jax
import jax.numpy as jnp
from jax.experimental import pallas as pl
from jax.experimental.pallas import tpu as pltpu

LANES = 128  # merged output head slab is 128 lanes wide -> unmasked full-lane stores


# ------------------------------ fused kernel -------------------------------

def _make_detr_kernel(L, D, n_cls, aux_loss):
    """Build the fused kernel with static layer count / head layout."""
    bf16 = jnp.bfloat16
    f32 = jnp.float32

    def kernel(src_ref, kvw_ref, kvb_ref, qe_ref,
               wq_ref, bq_ref, wo_ref, bo_ref,
               w1_ref, b1_ref, w2_ref, b2_ref,
               h0w_ref, h0b_ref, m1w_ref, m1b_ref, m2w_ref, m2b_ref,
               out_ref):
        S = src_ref.shape[1]
        Q = qe_ref.shape[0]

        def mxu(a, w):  # bf16 MXU matmul, f32 accumulation
            return jnp.dot(a.astype(bf16), w, preferred_element_type=f32)

        # --- fused input_proj + all-layer K/V projections (+ pos embed) -----
        # one (S, C) x (C, 2*L*D) MXU pass; weights/biases pre-folded at init.
        kv = mxu(src_ref[0], kvw_ref[...]) + kvb_ref[...]          # (S, 2LD) f32

        query_pos = qe_ref[...]                                    # (Q, D) f32
        tgt = jnp.zeros((Q, D), f32)
        lane = jax.lax.broadcasted_iota(jnp.int32, (Q, LANES), 1)  # hoisted

        # --- decoder: single-head cross-attn + FFN + residuals per layer ----
        # TODO(synk): the reference transformer is an injected module; this is
        # a DETR-style decoder stand-in (no LayerNorm / self-attn) and the
        # synthetic backbone's key_padding_mask is statically all-False, so
        # the mask-bias add is elided.
        for l in range(L):                                         # static unroll
            kp = kv[:, l * D:(l + 1) * D]                          # (S, D) keys
            vp = kv[:, (L + l) * D:(L + l + 1) * D]                # (S, D) values

            # 1/sqrt(D) is folded into wq/bq at init.
            qp = mxu(tgt + query_pos, wq_ref[l]) + bq_ref[l]       # (Q, D)
            # contract dim 1 of both operands -> no kp transpose materialized
            s = jax.lax.dot_general(qp.astype(bf16), kp.astype(bf16),
                                    (((1,), (1,)), ((), ())),
                                    preferred_element_type=f32)    # (Q, S)
            s = s - jnp.max(s, axis=-1, keepdims=True)
            p = jnp.exp(s)
            p = p * pl.reciprocal(jnp.sum(p, axis=-1, keepdims=True), approx=True)
            attn = jnp.dot(p.astype(bf16), vp.astype(bf16),
                           preferred_element_type=f32)             # (Q, D)
            tgt = tgt + mxu(attn, wo_ref[l]) + bo_ref[l]

            ff = jnp.maximum(mxu(tgt, w1_ref[l]) + b1_ref[l], 0.0) # (Q, F)
            tgt = tgt + mxu(ff, w2_ref[l]) + b2_ref[l]

            # --- prediction heads (only final layer unless aux_loss) --------
            if aux_loss or l == L - 1:
                # packed: class head at lanes [0:n_cls], box-MLP layer0 at [D:2D]
                h0 = mxu(tgt, h0w_ref[...]) + h0b_ref[...]         # (Q, 128)
                x = jnp.maximum(h0[:, D:2 * D], 0.0)               # (Q, D)
                x = jnp.maximum(mxu(x, m1w_ref[...]) + m1b_ref[...], 0.0)
                # box output columns packed at lanes [n_cls:n_cls+4]
                bx = jax.nn.sigmoid(mxu(x, m2w_ref[...]) + m2b_ref[...])
                # merged slab: logits in lanes [0:n_cls], boxes in [n_cls:n_cls+4]
                slab = jnp.where(lane < n_cls, h0, bx)
                out_ref[l if aux_loss else 0, 0] = slab.astype(out_ref.dtype)

    return kernel


# ------------------------- parameter initialization ------------------------

def init_params(key, *, num_channels=4, embed_dim=32, num_queries=8,
                num_classes=7, num_decoder_layers=2, ffn_dim=64,
                H=8, W=8, aux_loss=False):
    C, D, Q, L, F = num_channels, embed_dim, num_queries, num_decoder_layers, ffn_dim
    n_cls = num_classes + 1
    S = H * W
    assert n_cls <= D and 2 * D <= LANES and n_cls + 4 <= LANES

    keys = iter(jax.random.split(key, 64))

    def lin(kin, kout):
        # mimics nn.Linear / 1x1 Conv2d default init (uniform +/- 1/sqrt(fan_in))
        s_ = 1.0 / math.sqrt(kin)
        w = jax.random.uniform(next(keys), (kin, kout), jnp.float32, -s_, s_)
        b = jax.random.uniform(next(keys), (1, kout), jnp.float32, -s_, s_)
        return w, b

    proj_w, proj_b = lin(C, D)                   # Conv2d(C, D, 1) as (C, D)
    cls_w, cls_b = lin(D, n_cls)                 # class_embed
    m0_w, m0_b = lin(D, D)                       # box_embed MLP (3 layers)
    m1_w, m1_b = lin(D, D)
    m2_w, m2_b = lin(D, 4)
    query_embed = jax.random.normal(next(keys), (Q, D), jnp.float32)
    pos_embed = 0.02 * jax.random.normal(next(keys), (S, D), jnp.float32)

    wq, bq, wk, bk, wv, bv, wo, bo, w1, b1, w2, b2 = ([] for _ in range(12))
    for _ in range(L):
        for lw, lb, kin, kout in ((wq, bq, D, D), (wk, bk, D, D), (wv, bv, D, D),
                                  (wo, bo, D, D), (w1, b1, D, F), (w2, b2, F, D)):
            w, b = lin(kin, kout)
            lw.append(w)
            lb.append(b)

    # fold the 1/sqrt(D) attention scale into the Q projection (init-time, free)
    scale = 1.0 / math.sqrt(D)
    wq_s = jnp.stack(wq) * scale                 # (L, D, D)
    bq_s = jnp.stack(bq) * scale                 # (L, 1, D)

    # fold input_proj + pos-embed into all layers' K/V projections and pack
    # them into one lane-dense weight (C, 2*L*D) and bias (S, 2*L*D):
    #   kp_l = src @ (proj_w @ wk_l) + [(pos + proj_b) @ wk_l + bk_l]
    #   vp_l = src @ (proj_w @ wv_l) + [ proj_b @ wv_l + bv_l ]
    kv_w_blocks, kv_b_blocks = [], []
    for l in range(L):                           # K blocks first
        kv_w_blocks.append(proj_w @ wk[l])
        kv_b_blocks.append((pos_embed + proj_b) @ wk[l] + bk[l])
    for l in range(L):                           # then V blocks
        kv_w_blocks.append(proj_w @ wv[l])
        kv_b_blocks.append(jnp.broadcast_to(proj_b @ wv[l] + bv[l], (S, D)))
    kv_w = jnp.concatenate(kv_w_blocks, axis=1)  # (C, 2LD)
    kv_b = jnp.concatenate(kv_b_blocks, axis=1)  # (S, 2LD)

    # pack class head (lanes 0:n_cls) + box-MLP layer0 (lanes D:2D) into one
    # already-128-wide weight -> one MXU pass instead of two per head eval.
    head0_w = jnp.zeros((D, LANES), jnp.float32)
    head0_w = head0_w.at[:, :n_cls].set(cls_w).at[:, D:2 * D].set(m0_w)
    head0_b = jnp.zeros((1, LANES), jnp.float32)
    head0_b = head0_b.at[:, :n_cls].set(cls_b).at[:, D:2 * D].set(m0_b)

    # box output layer packed so its 4 columns land at lanes n_cls:n_cls+4
    m2_w_pack = jnp.zeros((D, LANES), jnp.float32).at[:, n_cls:n_cls + 4].set(m2_w)
    m2_b_pack = jnp.zeros((1, LANES), jnp.float32).at[:, n_cls:n_cls + 4].set(m2_b)

    bf16 = jnp.bfloat16
    return dict(
        embed_dim=D, num_queries=Q, ffn_dim=F, num_layers=L, n_cls=n_cls,
        aux_loss=aux_loss,
        query_embed=query_embed,
        kv_w=kv_w.astype(bf16), kv_b=kv_b,
        wq=wq_s.astype(bf16), bq=bq_s,
        wo=jnp.stack(wo).astype(bf16), bo=jnp.stack(bo),
        w1=jnp.stack(w1).astype(bf16), b1=jnp.stack(b1),
        w2=jnp.stack(w2).astype(bf16), b2=jnp.stack(b2),
        head0_w=head0_w.astype(bf16), head0_b=head0_b,
        m1_w=m1_w.astype(bf16), m1_b=m1_b,
        m2_w=m2_w_pack.astype(bf16), m2_b=m2_b_pack,
    )


# -------------------------------- forward ----------------------------------

def detr_forward(params, samples):
    B, C, H, W = samples.shape
    S = H * W
    D = params["embed_dim"]
    Q = params["num_queries"]
    F = params["ffn_dim"]
    L = params["num_layers"]
    n_cls = params["n_cls"]
    aux = params["aux_loss"]
    n_hs = L if aux else 1
    KV = 2 * L * D

    # --- backbone (synthetic stand-in) --------------------------------------
    # TODO(synk): the reference backbone (ResNet + NestedTensor) is an external
    # injected module; here: identity features as a contiguous (B, S, C) token
    # slab, an all-False padding mask, and a fixed learned positional embedding
    # (folded into the K-projection bias at init).
    src_tokens = jnp.transpose(samples.reshape(B, C, S), (0, 2, 1))  # (B, S, C)

    full2 = lambda shape: pl.BlockSpec(shape, lambda b: (0, 0))
    full3 = lambda shape: pl.BlockSpec(shape, lambda b: (0, 0, 0))

    in_specs = [
        pl.BlockSpec((1, S, C), lambda b: (b, 0, 0)),   # src tokens (per batch)
        full2((C, KV)), full2((S, KV)),                 # fused proj+K/V weight/bias
        full2((Q, D)),                                  # query embed
        full3((L, D, D)), full3((L, 1, D)),             # wq, bq (scale folded)
        full3((L, D, D)), full3((L, 1, D)),             # wo, bo
        full3((L, D, F)), full3((L, 1, F)),             # w1, b1
        full3((L, F, D)), full3((L, 1, D)),             # w2, b2
        full2((D, LANES)), full2((1, LANES)),           # packed cls + box-MLP-0
        full2((D, D)), full2((1, D)),                   # box MLP layer 1
        full2((D, LANES)), full2((1, LANES)),           # box MLP layer 2 (packed)
    ]
    out_spec = pl.BlockSpec((n_hs, 1, Q, LANES), lambda b: (0, b, 0, 0))
    out_shape = jax.ShapeDtypeStruct((n_hs, B, Q, LANES), jnp.float32)

    kernel = _make_detr_kernel(L, D, n_cls, aux)
    slab = pl.pallas_call(
        kernel,
        out_shape=out_shape,
        grid=(B,),
        in_specs=in_specs,
        out_specs=out_spec,
        compiler_params=pltpu.CompilerParams(dimension_semantics=("parallel",)),
    )(src_tokens, params["kv_w"], params["kv_b"], params["query_embed"],
      params["wq"], params["bq"], params["wo"], params["bo"],
      params["w1"], params["b1"], params["w2"], params["b2"],
      params["head0_w"], params["head0_b"], params["m1_w"], params["m1_b"],
      params["m2_w"], params["m2_b"])

    out_logits = slab[..., :n_cls]                 # (n_hs, B, Q, num_classes+1)
    out_boxes = slab[..., n_cls:n_cls + 4]         # (n_hs, B, Q, 4)

    out = {"pred_logits": out_logits[-1], "pred_boxes": out_boxes[-1]}
    if aux:
        out["aux_outs"] = [{"pred_logits": a, "pred_boxes": b}
                           for a, b in zip(out_logits[:-1], out_boxes[:-1])]
    return out


# --------------------------------- main -------------------------------------

if __name__ == "__main__":
    key = jax.random.PRNGKey(0)
    pkey, xkey = jax.random.split(key)

    B, C, H, W = 2, 4, 8, 8          # samples: NCHW
    params = init_params(pkey, num_channels=C, embed_dim=32, num_queries=8,
                         num_classes=7, num_decoder_layers=2, ffn_dim=64,
                         H=H, W=W, aux_loss=False)
    samples = jax.random.normal(xkey, (B, C, H, W), jnp.float32)

    out = detr_forward(params, samples)
    jax.block_until_ready((out["pred_logits"], out["pred_boxes"]))

    assert out["pred_logits"].shape == (B, 8, 8)   # (B, num_queries, num_classes+1)
    assert out["pred_boxes"].shape == (B, 8, 4)    # (B, num_queries, 4)
    assert bool(jnp.all((out["pred_boxes"] >= 0.0) & (out["pred_boxes"] <= 1.0)))
    print("KERNEL_OK")
</pallas_src>

<mosaic_0001>
module attributes {stable_mosaic.version = 11 : i64} {
  func.func @kernel(%arg0: i32, %arg1: memref<1x64x4xf32, #tpu.memory_space<vmem>>, %arg2: memref<4x128xbf16, #tpu.memory_space<vmem>>, %arg3: memref<64x128xf32, #tpu.memory_space<vmem>>, %arg4: memref<8x32xf32, #tpu.memory_space<vmem>>, %arg5: memref<2x32x32xbf16, #tpu.memory_space<vmem>>, %arg6: memref<2x1x32xf32, #tpu.memory_space<vmem>>, %arg7: memref<2x32x32xbf16, #tpu.memory_space<vmem>>, %arg8: memref<2x1x32xf32, #tpu.memory_space<vmem>>, %arg9: memref<2x32x64xbf16, #tpu.memory_space<vmem>>, %arg10: memref<2x1x64xf32, #tpu.memory_space<vmem>>, %arg11: memref<2x64x32xbf16, #tpu.memory_space<vmem>>, %arg12: memref<2x1x32xf32, #tpu.memory_space<vmem>>, %arg13: memref<32x128xbf16, #tpu.memory_space<vmem>>, %arg14: memref<1x128xf32, #tpu.memory_space<vmem>>, %arg15: memref<32x32xbf16, #tpu.memory_space<vmem>>, %arg16: memref<1x32xf32, #tpu.memory_space<vmem>>, %arg17: memref<32x128xbf16, #tpu.memory_space<vmem>>, %arg18: memref<1x128xf32, #tpu.memory_space<vmem>>, %arg19: memref<1x1x8x128xf32, #tpu.memory_space<vmem>>) attributes {dimension_semantics = [#tpu.dimension_semantics<parallel>], iteration_bounds = array<i64: 2>, scalar_prefetch = 0 : i64, scratch_operands = 0 : i64, tpu.core_type = #tpu.core_type<tc>, window_params = [{transform_indices = @transform_0, window_bounds = array<i64: 1, 64, 4>}, {pipeline_mode = #tpu.pipeline_mode<synchronous>, transform_indices = @transform_1, window_bounds = array<i64: 4, 128>}, {pipeline_mode = #tpu.pipeline_mode<synchronous>, transform_indices = @transform_2, window_bounds = array<i64: 64, 128>}, {pipeline_mode = #tpu.pipeline_mode<synchronous>, transform_indices = @transform_3, window_bounds = array<i64: 8, 32>}, {pipeline_mode = #tpu.pipeline_mode<synchronous>, transform_indices = @transform_4, window_bounds = array<i64: 2, 32, 32>}, {pipeline_mode = #tpu.pipeline_mode<synchronous>, transform_indices = @transform_5, window_bounds = array<i64: 2, 1, 32>}, {pipeline_mode = #tpu.pipeline_mode<synchronous>, transform_indices = @transform_6, window_bounds = array<i64: 2, 32, 32>}, {pipeline_mode = #tpu.pipeline_mode<synchronous>, transform_indices = @transform_7, window_bounds = array<i64: 2, 1, 32>}, {pipeline_mode = #tpu.pipeline_mode<synchronous>, transform_indices = @transform_8, window_bounds = array<i64: 2, 32, 64>}, {pipeline_mode = #tpu.pipeline_mode<synchronous>, transform_indices = @transform_9, window_bounds = array<i64: 2, 1, 64>}, {pipeline_mode = #tpu.pipeline_mode<synchronous>, transform_indices = @transform_10, window_bounds = array<i64: 2, 64, 32>}, {pipeline_mode = #tpu.pipeline_mode<synchronous>, transform_indices = @transform_11, window_bounds = array<i64: 2, 1, 32>}, {pipeline_mode = #tpu.pipeline_mode<synchronous>, transform_indices = @transform_12, window_bounds = array<i64: 32, 128>}, {pipeline_mode = #tpu.pipeline_mode<synchronous>, transform_indices = @transform_13, window_bounds = array<i64: 1, 128>}, {pipeline_mode = #tpu.pipeline_mode<synchronous>, transform_indices = @transform_14, window_bounds = array<i64: 32, 32>}, {pipeline_mode = #tpu.pipeline_mode<synchronous>, transform_indices = @transform_15, window_bounds = array<i64: 1, 32>}, {pipeline_mode = #tpu.pipeline_mode<synchronous>, transform_indices = @transform_16, window_bounds = array<i64: 32, 128>}, {pipeline_mode = #tpu.pipeline_mode<synchronous>, transform_indices = @transform_17, window_bounds = array<i64: 1, 128>}, {transform_indices = @transform_18, window_bounds = array<i64: 1, 1, 8, 128>}]} {
    %c0 = arith.constant 0 : index
    %c0_0 = arith.constant 0 : index
    %c0_1 = arith.constant 0 : index
    %0 = vector.load %arg1[%c0, %c0_0, %c0_1] : memref<1x64x4xf32, #tpu.memory_space<vmem>>, vector<1x64x4xf32>
    %1 = vector.shape_cast %0 : vector<1x64x4xf32> to vector<64x4xf32>
    %c0_2 = arith.constant 0 : index
    %c0_3 = arith.constant 0 : index
    %2 = vector.load %arg2[%c0_2, %c0_3] : memref<4x128xbf16, #tpu.memory_space<vmem>>, vector<4x128xbf16>
    %3 = arith.truncf %1 : vector<64x4xf32> to vector<64x4xbf16>
    %cst = arith.constant dense<0.000000e+00> : vector<64x128xf32>
    %4 = tpu.matmul %3, %2, %cst {dimension_numbers = #tpu.dot_dimension_numbers<[1], [0], [0], [1], [0, 0, 1, 1], [], []>} : vector<64x4xbf16>, vector<4x128xbf16>, vector<64x128xf32> -> vector<64x128xf32>
    %c0_4 = arith.constant 0 : index
    %c0_5 = arith.constant 0 : index
    %5 = vector.load %arg3[%c0_4, %c0_5] : memref<64x128xf32, #tpu.memory_space<vmem>>, vector<64x128xf32>
    %6 = arith.addf %4, %5 : vector<64x128xf32>
    %c0_6 = arith.constant 0 : index
    %c0_7 = arith.constant 0 : index
    %7 = vector.load %arg4[%c0_6, %c0_7] : memref<8x32xf32, #tpu.memory_space<vmem>>, vector<8x32xf32>
    %cst_8 = arith.constant 0.000000e+00 : f32
    %8 = vector.broadcast %cst_8 : f32 to vector<8x32xf32>
    %9 = tpu.iota {dimensions = array<i32: 1>} : vector<8x128xi32>
    %10 = vector.extract_strided_slice %6 {offsets = [0, 0], sizes = [64, 32], strides = [1, 1]} : vector<64x128xf32> to vector<64x32xf32>
    %11 = vector.extract_strided_slice %6 {offsets = [0, 64], sizes = [64, 32], strides = [1, 1]} : vector<64x128xf32> to vector<64x32xf32>
    %12 = arith.addf %8, %7 : vector<8x32xf32>
    %c0_9 = arith.constant 0 : index
    %c0_10 = arith.constant 0 : index
    %c0_11 = arith.constant 0 : index
    %13 = vector.load %arg5[%c0_9, %c0_10, %c0_11] : memref<2x32x32xbf16, #tpu.memory_space<vmem>>, vector<1x32x32xbf16>
    %14 = vector.shape_cast %13 : vector<1x32x32xbf16> to vector<32x32xbf16>
    %15 = arith.truncf %12 : vector<8x32xf32> to vector<8x32xbf16>
    %cst_12 = arith.constant dense<0.000000e+00> : vector<8x32xf32>
    %16 = tpu.matmul %15, %14, %cst_12 {dimension_numbers = #tpu.dot_dimension_numbers<[1], [0], [0], [1], [0, 0, 1, 1], [], []>} : vector<8x32xbf16>, vector<32x32xbf16>, vector<8x32xf32> -> vector<8x32xf32>
    %c0_13 = arith.constant 0 : index
    %c0_14 = arith.constant 0 : index
    %c0_15 = arith.constant 0 : index
    %17 = vector.load %arg6[%c0_13, %c0_14, %c0_15] : memref<2x1x32xf32, #tpu.memory_space<vmem>>, vector<1x1x32xf32>
    %18 = vector.shape_cast %17 : vector<1x1x32xf32> to vector<1x32xf32>
    %19 = vector.broadcast %18 : vector<1x32xf32> to vector<8x32xf32>
    %20 = arith.addf %16, %19 : vector<8x32xf32>
    %21 = arith.truncf %20 : vector<8x32xf32> to vector<8x32xbf16>
    %22 = arith.truncf %10 : vector<64x32xf32> to vector<64x32xbf16>
    %cst_16 = arith.constant dense<0.000000e+00> : vector<8x64xf32>
    %23 = tpu.matmul %21, %22, %cst_16 {dimension_numbers = #tpu.dot_dimension_numbers<[1], [1], [0], [0], [0, 0, 1, 0], [], []>} : vector<8x32xbf16>, vector<64x32xbf16>, vector<8x64xf32> -> vector<8x64xf32>
    %cst_17 = arith.constant dense<0xFF800000> : vector<8xf32>
    %24 = vector.multi_reduction <maximumf>, %23, %cst_17 [1] : vector<8x64xf32> to vector<8xf32>
    %25 = vector.shape_cast %24 : vector<8xf32> to vector<8x1xf32>
    %26 = vector.broadcast %25 : vector<8x1xf32> to vector<8x64xf32>
    %27 = arith.subf %23, %26 : vector<8x64xf32>
    %28 = math.exp %27 : vector<8x64xf32>
    %cst_18 = arith.constant dense<0.000000e+00> : vector<8xf32>
    %29 = vector.multi_reduction <add>, %28, %cst_18 [1] : vector<8x64xf32> to vector<8xf32>
    %30 = vector.shape_cast %29 : vector<8xf32> to vector<8x1xf32>
    %31 = tpu.reciprocal %30 {approx = true} : vector<8x1xf32> -> vector<8x1xf32>
    %32 = vector.broadcast %31 : vector<8x1xf32> to vector<8x64xf32>
    %33 = arith.mulf %28, %32 : vector<8x64xf32>
    %34 = arith.truncf %33 : vector<8x64xf32> to vector<8x64xbf16>
    %35 = arith.truncf %11 : vector<64x32xf32> to vector<64x32xbf16>
    %cst_19 = arith.constant dense<0.000000e+00> : vector<8x32xf32>
    %36 = tpu.matmul %34, %35, %cst_19 {dimension_numbers = #tpu.dot_dimension_numbers<[1], [0], [0], [1], [0, 0, 1, 1], [], []>} : vector<8x64xbf16>, vector<64x32xbf16>, vector<8x32xf32> -> vector<8x32xf32>
    %c0_20 = arith.constant 0 : index
    %c0_21 = arith.constant 0 : index
    %c0_22 = arith.constant 0 : index
    %37 = vector.load %arg7[%c0_20, %c0_21, %c0_22] : memref<2x32x32xbf16, #tpu.memory_space<vmem>>, vector<1x32x32xbf16>
    %38 = vector.shape_cast %37 : vector<1x32x32xbf16> to vector<32x32xbf16>
    %39 = arith.truncf %36 : vector<8x32xf32> to vector<8x32xbf16>
    %cst_23 = arith.constant dense<0.000000e+00> : vector<8x32xf32>
    %40 = tpu.matmul %39, %38, %cst_23 {dimension_numbers = #tpu.dot_dimension_numbers<[1], [0], [0], [1], [0, 0, 1, 1], [], []>} : vector<8x32xbf16>, vector<32x32xbf16>, vector<8x32xf32> -> vector<8x32xf32>
    %41 = arith.addf %8, %40 : vector<8x32xf32>
    %c0_24 = arith.constant 0 : index
    %c0_25 = arith.constant 0 : index
    %c0_26 = arith.constant 0 : index
    %42 = vector.load %arg8[%c0_24, %c0_25, %c0_26] : memref<2x1x32xf32, #tpu.memory_space<vmem>>, vector<1x1x32xf32>
    %43 = vector.shape_cast %42 : vector<1x1x32xf32> to vector<1x32xf32>
    %44 = vector.broadcast %43 : vector<1x32xf32> to vector<8x32xf32>
    %45 = arith.addf %41, %44 : vector<8x32xf32>
    %c0_27 = arith.constant 0 : index
    %c0_28 = arith.constant 0 : index
    %c0_29 = arith.constant 0 : index
    %46 = vector.load %arg9[%c0_27, %c0_28, %c0_29] : memref<2x32x64xbf16, #tpu.memory_space<vmem>>, vector<1x32x64xbf16>
    %47 = vector.shape_cast %46 : vector<1x32x64xbf16> to vector<32x64xbf16>
    %48 = arith.truncf %45 : vector<8x32xf32> to vector<8x32xbf16>
    %cst_30 = arith.constant dense<0.000000e+00> : vector<8x64xf32>
    %49 = tpu.matmul %48, %47, %cst_30 {dimension_numbers = #tpu.dot_dimension_numbers<[1], [0], [0], [1], [0, 0, 1, 1], [], []>} : vector<8x32xbf16>, vector<32x64xbf16>, vector<8x64xf32> -> vector<8x64xf32>
    %c0_31 = arith.constant 0 : index
    %c0_32 = arith.constant 0 : index
    %c0_33 = arith.constant 0 : index
    %50 = vector.load %arg10[%c0_31, %c0_32, %c0_33] : memref<2x1x64xf32, #tpu.memory_space<vmem>>, vector<1x1x64xf32>
    %51 = vector.shape_cast %50 : vector<1x1x64xf32> to vector<1x64xf32>
    %52 = vector.broadcast %51 : vector<1x64xf32> to vector<8x64xf32>
    %53 = arith.addf %49, %52 : vector<8x64xf32>
    %cst_34 = arith.constant 0.000000e+00 : f32
    %54 = vector.broadcast %cst_34 : f32 to vector<8x64xf32>
    %55 = arith.maximumf %53, %54 : vector<8x64xf32>
    %c0_35 = arith.constant 0 : index
    %c0_36 = arith.constant 0 : index
    %c0_37 = arith.constant 0 : index
    %56 = vector.load %arg11[%c0_35, %c0_36, %c0_37] : memref<2x64x32xbf16, #tpu.memory_space<vmem>>, vector<1x64x32xbf16>
    %57 = vector.shape_cast %56 : vector<1x64x32xbf16> to vector<64x32xbf16>
    %58 = arith.truncf %55 : vector<8x64xf32> to vector<8x64xbf16>
    %cst_38 = arith.constant dense<0.000000e+00> : vector<8x32xf32>
    %59 = tpu.matmul %58, %57, %cst_38 {dimension_numbers = #tpu.dot_dimension_numbers<[1], [0], [0], [1], [0, 0, 1, 1], [], []>} : vector<8x64xbf16>, vector<64x32xbf16>, vector<8x32xf32> -> vector<8x32xf32>
    %60 = arith.addf %45, %59 : vector<8x32xf32>
    %c0_39 = arith.constant 0 : index
    %c0_40 = arith.constant 0 : index
    %c0_41 = arith.constant 0 : index
    %61 = vector.load %arg12[%c0_39, %c0_40, %c0_41] : memref<2x1x32xf32, #tpu.memory_space<vmem>>, vector<1x1x32xf32>
    %62 = vector.shape_cast %61 : vector<1x1x32xf32> to vector<1x32xf32>
    %63 = vector.broadcast %62 : vector<1x32xf32> to vector<8x32xf32>
    %64 = arith.addf %60, %63 : vector<8x32xf32>
    %65 = vector.extract_strided_slice %6 {offsets = [0, 32], sizes = [64, 32], strides = [1, 1]} : vector<64x128xf32> to vector<64x32xf32>
    %66 = vector.extract_strided_slice %6 {offsets = [0, 96], sizes = [64, 32], strides = [1, 1]} : vector<64x128xf32> to vector<64x32xf32>
    %67 = arith.addf %64, %7 : vector<8x32xf32>
    %c1 = arith.constant 1 : index
    %c0_42 = arith.constant 0 : index
    %c0_43 = arith.constant 0 : index
    %68 = vector.load %arg5[%c1, %c0_42, %c0_43] : memref<2x32x32xbf16, #tpu.memory_space<vmem>>, vector<1x32x32xbf16>
    %69 = vector.shape_cast %68 : vector<1x32x32xbf16> to vector<32x32xbf16>
    %70 = arith.truncf %67 : vector<8x32xf32> to vector<8x32xbf16>
    %cst_44 = arith.constant dense<0.000000e+00> : vector<8x32xf32>
    %71 = tpu.matmul %70, %69, %cst_44 {dimension_numbers = #tpu.dot_dimension_numbers<[1], [0], [0], [1], [0, 0, 1, 1], [], []>} : vector<8x32xbf16>, vector<32x32xbf16>, vector<8x32xf32> -> vector<8x32xf32>
    %c1_45 = arith.constant 1 : index
    %c0_46 = arith.constant 0 : index
    %c0_47 = arith.constant 0 : index
    %72 = vector.load %arg6[%c1_45, %c0_46, %c0_47] : memref<2x1x32xf32, #tpu.memory_space<vmem>>, vector<1x1x32xf32>
    %73 = vector.shape_cast %72 : vector<1x1x32xf32> to vector<1x32xf32>
    %74 = vector.broadcast %73 : vector<1x32xf32> to vector<8x32xf32>
    %75 = arith.addf %71, %74 : vector<8x32xf32>
    %76 = arith.truncf %75 : vector<8x32xf32> to vector<8x32xbf16>
    %77 = arith.truncf %65 : vector<64x32xf32> to vector<64x32xbf16>
    %cst_48 = arith.constant dense<0.000000e+00> : vector<8x64xf32>
    %78 = tpu.matmul %76, %77, %cst_48 {dimension_numbers = #tpu.dot_dimension_numbers<[1], [1], [0], [0], [0, 0, 1, 0], [], []>} : vector<8x32xbf16>, vector<64x32xbf16>, vector<8x64xf32> -> vector<8x64xf32>
    %cst_49 = arith.constant dense<0xFF800000> : vector<8xf32>
    %79 = vector.multi_reduction <maximumf>, %78, %cst_49 [1] : vector<8x64xf32> to vector<8xf32>
    %80 = vector.shape_cast %79 : vector<8xf32> to vector<8x1xf32>
    %81 = vector.broadcast %80 : vector<8x1xf32> to vector<8x64xf32>
    %82 = arith.subf %78, %81 : vector<8x64xf32>
    %83 = math.exp %82 : vector<8x64xf32>
    %cst_50 = arith.constant dense<0.000000e+00> : vector<8xf32>
    %84 = vector.multi_reduction <add>, %83, %cst_50 [1] : vector<8x64xf32> to vector<8xf32>
    %85 = vector.shape_cast %84 : vector<8xf32> to vector<8x1xf32>
    %86 = tpu.reciprocal %85 {approx = true} : vector<8x1xf32> -> vector<8x1xf32>
    %87 = vector.broadcast %86 : vector<8x1xf32> to vector<8x64xf32>
    %88 = arith.mulf %83, %87 : vector<8x64xf32>
    %89 = arith.truncf %88 : vector<8x64xf32> to vector<8x64xbf16>
    %90 = arith.truncf %66 : vector<64x32xf32> to vector<64x32xbf16>
    %cst_51 = arith.constant dense<0.000000e+00> : vector<8x32xf32>
    %91 = tpu.matmul %89, %90, %cst_51 {dimension_numbers = #tpu.dot_dimension_numbers<[1], [0], [0], [1], [0, 0, 1, 1], [], []>} : vector<8x64xbf16>, vector<64x32xbf16>, vector<8x32xf32> -> vector<8x32xf32>
    %c1_52 = arith.constant 1 : index
    %c0_53 = arith.constant 0 : index
    %c0_54 = arith.constant 0 : index
    %92 = vector.load %arg7[%c1_52, %c0_53, %c0_54] : memref<2x32x32xbf16, #tpu.memory_space<vmem>>, vector<1x32x32xbf16>
    %93 = vector.shape_cast %92 : vector<1x32x32xbf16> to vector<32x32xbf16>
    %94 = arith.truncf %91 : vector<8x32xf32> to vector<8x32xbf16>
    %cst_55 = arith.constant dense<0.000000e+00> : vector<8x32xf32>
    %95 = tpu.matmul %94, %93, %cst_55 {dimension_numbers = #tpu.dot_dimension_numbers<[1], [0], [0], [1], [0, 0, 1, 1], [], []>} : vector<8x32xbf16>, vector<32x32xbf16>, vector<8x32xf32> -> vector<8x32xf32>
    %96 = arith.addf %64, %95 : vector<8x32xf32>
    %c1_56 = arith.constant 1 : index
    %c0_57 = arith.constant 0 : index
    %c0_58 = arith.constant 0 : index
    %97 = vector.load %arg8[%c1_56, %c0_57, %c0_58] : memref<2x1x32xf32, #tpu.memory_space<vmem>>, vector<1x1x32xf32>
    %98 = vector.shape_cast %97 : vector<1x1x32xf32> to vector<1x32xf32>
    %99 = vector.broadcast %98 : vector<1x32xf32> to vector<8x32xf32>
    %100 = arith.addf %96, %99 : vector<8x32xf32>
    %c1_59 = arith.constant 1 : index
    %c0_60 = arith.constant 0 : index
    %c0_61 = arith.constant 0 : index
    %101 = vector.load %arg9[%c1_59, %c0_60, %c0_61] : memref<2x32x64xbf16, #tpu.memory_space<vmem>>, vector<1x32x64xbf16>
    %102 = vector.shape_cast %101 : vector<1x32x64xbf16> to vector<32x64xbf16>
    %103 = arith.truncf %100 : vector<8x32xf32> to vector<8x32xbf16>
    %cst_62 = arith.constant dense<0.000000e+00> : vector<8x64xf32>
    %104 = tpu.matmul %103, %102, %cst_62 {dimension_numbers = #tpu.dot_dimension_numbers<[1], [0], [0], [1], [0, 0, 1, 1], [], []>} : vector<8x32xbf16>, vector<32x64xbf16>, vector<8x64xf32> -> vector<8x64xf32>
    %c1_63 = arith.constant 1 : index
    %c0_64 = arith.constant 0 : index
    %c0_65 = arith.constant 0 : index
    %105 = vector.load %arg10[%c1_63, %c0_64, %c0_65] : memref<2x1x64xf32, #tpu.memory_space<vmem>>, vector<1x1x64xf32>
    %106 = vector.shape_cast %105 : vector<1x1x64xf32> to vector<1x64xf32>
    %107 = vector.broadcast %106 : vector<1x64xf32> to vector<8x64xf32>
    %108 = arith.addf %104, %107 : vector<8x64xf32>
    %cst_66 = arith.constant 0.000000e+00 : f32
    %109 = vector.broadcast %cst_66 : f32 to vector<8x64xf32>
    %110 = arith.maximumf %108, %109 : vector<8x64xf32>
    %c1_67 = arith.constant 1 : index
    %c0_68 = arith.constant 0 : index
    %c0_69 = arith.constant 0 : index
    %111 = vector.load %arg11[%c1_67, %c0_68, %c0_69] : memref<2x64x32xbf16, #tpu.memory_space<vmem>>, vector<1x64x32xbf16>
    %112 = vector.shape_cast %111 : vector<1x64x32xbf16> to vector<64x32xbf16>
    %113 = arith.truncf %110 : vector<8x64xf32> to vector<8x64xbf16>
    %cst_70 = arith.constant dense<0.000000e+00> : vector<8x32xf32>
    %114 = tpu.matmul %113, %112, %cst_70 {dimension_numbers = #tpu.dot_dimension_numbers<[1], [0], [0], [1], [0, 0, 1, 1], [], []>} : vector<8x64xbf16>, vector<64x32xbf16>, vector<8x32xf32> -> vector<8x32xf32>
    %115 = arith.addf %100, %114 : vector<8x32xf32>
    %c1_71 = arith.constant 1 : index
    %c0_72 = arith.constant 0 : index
    %c0_73 = arith.constant 0 : index
    %116 = vector.load %arg12[%c1_71, %c0_72, %c0_73] : memref<2x1x32xf32, #tpu.memory_space<vmem>>, vector<1x1x32xf32>
    %117 = vector.shape_cast %116 : vector<1x1x32xf32> to vector<1x32xf32>
    %118 = vector.broadcast %117 : vector<1x32xf32> to vector<8x32xf32>
    %119 = arith.addf %115, %118 : vector<8x32xf32>
    %c0_74 = arith.constant 0 : index
    %c0_75 = arith.constant 0 : index
    %120 = vector.load %arg13[%c0_74, %c0_75] : memref<32x128xbf16, #tpu.memory_space<vmem>>, vector<32x128xbf16>
    %121 = arith.truncf %119 : vector<8x32xf32> to vector<8x32xbf16>
    %cst_76 = arith.constant dense<0.000000e+00> : vector<8x128xf32>
    %122 = tpu.matmul %121, %120, %cst_76 {dimension_numbers = #tpu.dot_dimension_numbers<[1], [0], [0], [1], [0, 0, 1, 1], [], []>} : vector<8x32xbf16>, vector<32x128xbf16>, vector<8x128xf32> -> vector<8x128xf32>
    %c0_77 = arith.constant 0 : index
    %c0_78 = arith.constant 0 : index
    %123 = vector.load %arg14[%c0_77, %c0_78] : memref<1x128xf32, #tpu.memory_space<vmem>>, vector<1x128xf32>
    %124 = vector.broadcast %123 : vector<1x128xf32> to vector<8x128xf32>
    %125 = arith.addf %122, %124 : vector<8x128xf32>
    %126 = vector.extract_strided_slice %125 {offsets = [0, 32], sizes = [8, 32], strides = [1, 1]} : vector<8x128xf32> to vector<8x32xf32>
    %cst_79 = arith.constant 0.000000e+00 : f32
    %127 = vector.broadcast %cst_79 : f32 to vector<8x32xf32>
    %128 = arith.maximumf %126, %127 : vector<8x32xf32>
    %c0_80 = arith.constant 0 : index
    %c0_81 = arith.constant 0 : index
    %129 = vector.load %arg15[%c0_80, %c0_81] : memref<32x32xbf16, #tpu.memory_space<vmem>>, vector<32x32xbf16>
    %130 = arith.truncf %128 : vector<8x32xf32> to vector<8x32xbf16>
    %cst_82 = arith.constant dense<0.000000e+00> : vector<8x32xf32>
    %131 = tpu.matmul %130, %129, %cst_82 {dimension_numbers = #tpu.dot_dimension_numbers<[1], [0], [0], [1], [0, 0, 1, 1], [], []>} : vector<8x32xbf16>, vector<32x32xbf16>, vector<8x32xf32> -> vector<8x32xf32>
    %c0_83 = arith.constant 0 : index
    %c0_84 = arith.constant 0 : index
    %132 = vector.load %arg16[%c0_83, %c0_84] : memref<1x32xf32, #tpu.memory_space<vmem>>, vector<1x32xf32>
    %133 = vector.broadcast %132 : vector<1x32xf32> to vector<8x32xf32>
    %134 = arith.addf %131, %133 : vector<8x32xf32>
    %cst_85 = arith.constant 0.000000e+00 : f32
    %135 = vector.broadcast %cst_85 : f32 to vector<8x32xf32>
    %136 = arith.maximumf %134, %135 : vector<8x32xf32>
    %c0_86 = arith.constant 0 : index
    %c0_87 = arith.constant 0 : index
    %137 = vector.load %arg17[%c0_86, %c0_87] : memref<32x128xbf16, #tpu.memory_space<vmem>>, vector<32x128xbf16>
    %138 = arith.truncf %136 : vector<8x32xf32> to vector<8x32xbf16>
    %cst_88 = arith.constant dense<0.000000e+00> : vector<8x128xf32>
    %139 = tpu.matmul %138, %137, %cst_88 {dimension_numbers = #tpu.dot_dimension_numbers<[1], [0], [0], [1], [0, 0, 1, 1], [], []>} : vector<8x32xbf16>, vector<32x128xbf16>, vector<8x128xf32> -> vector<8x128xf32>
    %c0_89 = arith.constant 0 : index
    %c0_90 = arith.constant 0 : index
    %140 = vector.load %arg18[%c0_89, %c0_90] : memref<1x128xf32, #tpu.memory_space<vmem>>, vector<1x128xf32>
    %141 = vector.broadcast %140 : vector<1x128xf32> to vector<8x128xf32>
    %142 = arith.addf %139, %141 : vector<8x128xf32>
    %143 = arith.negf %142 : vector<8x128xf32>
    %144 = math.exp %143 : vector<8x128xf32>
    %cst_91 = arith.constant 1.000000e+00 : f32
    %145 = vector.broadcast %cst_91 : f32 to vector<8x128xf32>
    %146 = arith.addf %145, %144 : vector<8x128xf32>
    %147 = arith.divf %145, %146 : vector<8x128xf32>
    %c8_i32 = arith.constant 8 : i32
    %148 = vector.broadcast %c8_i32 : i32 to vector<8x128xi32>
    %149 = arith.cmpi slt, %9, %148 : vector<8x128xi32>
    %150 = arith.select %149, %125, %147 : vector<8x128xi1>, vector<8x128xf32>
    %c0_92 = arith.constant 0 : index
    %c0_93 = arith.constant 0 : index
    %c0_94 = arith.constant 0 : index
    %c0_95 = arith.constant 0 : index
    %151 = vector.load %arg19[%c0_92, %c0_93, %c0_94, %c0_95] : memref<1x1x8x128xf32, #tpu.memory_space<vmem>>, vector<1x1x8x128xf32>
    %152 = vector.shape_cast %151 : vector<1x1x8x128xf32> to vector<8x128xf32>
    %153 = vector.shape_cast %150 : vector<8x128xf32> to vector<1x1x8x128xf32>
    tpu.vector_store %arg19[%c0_92, %c0_93, %c0_94, %c0_95], %153 {strides = array<i32>} : memref<1x1x8x128xf32, #tpu.memory_space<vmem>>, vector<1x1x8x128xf32>,
    return
  }
  func.func @transform_0(%arg0: i32) -> (i32, i32, i32) {
    %c0_i32 = arith.constant 0 : i32
    %c0_i32_0 = arith.constant 0 : i32
    %c0_i32_1 = arith.constant 0 : i32
    return %arg0, %c0_i32, %c0_i32_0 : i32, i32, i32
  }
  func.func @transform_1(%arg0: i32) -> (i32, i32) {
    %c0_i32 = arith.constant 0 : i32
    %c0_i32_0 = arith.constant 0 : i32
    %c0_i32_1 = arith.constant 0 : i32
    return %c0_i32, %c0_i32_0 : i32, i32
  }
  func.func @transform_2(%arg0: i32) -> (i32, i32) {
    %c0_i32 = arith.constant 0 : i32
    %c0_i32_0 = arith.constant 0 : i32
    %c0_i32_1 = arith.constant 0 : i32
    return %c0_i32, %c0_i32_0 : i32, i32
  }
  func.func @transform_3(%arg0: i32) -> (i32, i32) {
    %c0_i32 = arith.constant 0 : i32
    %c0_i32_0 = arith.constant 0 : i32
    %c0_i32_1 = arith.constant 0 : i32
    return %c0_i32, %c0_i32_0 : i32, i32
  }
  func.func @transform_4(%arg0: i32) -> (i32, i32, i32) {
    %c0_i32 = arith.constant 0 : i32
    %c0_i32_0 = arith.constant 0 : i32
    %c0_i32_1 = arith.constant 0 : i32
    %c0_i32_2 = arith.constant 0 : i32
    return %c0_i32, %c0_i32_0, %c0_i32_1 : i32, i32, i32
  }
  func.func @transform_5(%arg0: i32) -> (i32, i32, i32) {
    %c0_i32 = arith.constant 0 : i32
    %c0_i32_0 = arith.constant 0 : i32
    %c0_i32_1 = arith.constant 0 : i32
    %c0_i32_2 = arith.constant 0 : i32
    return %c0_i32, %c0_i32_0, %c0_i32_1 : i32, i32, i32
  }
  func.func @transform_6(%arg0: i32) -> (i32, i32, i32) {
    %c0_i32 = arith.constant 0 : i32
    %c0_i32_0 = arith.constant 0 : i32
    %c0_i32_1 = arith.constant 0 : i32
    %c0_i32_2 = arith.constant 0 : i32
    return %c0_i32, %c0_i32_0, %c0_i32_1 : i32, i32, i32
  }
  func.func @transform_7(%arg0: i32) -> (i32, i32, i32) {
    %c0_i32 = arith.constant 0 : i32
    %c0_i32_0 = arith.constant 0 : i32
    %c0_i32_1 = arith.constant 0 : i32
    %c0_i32_2 = arith.constant 0 : i32
    return %c0_i32, %c0_i32_0, %c0_i32_1 : i32, i32, i32
  }
  func.func @transform_8(%arg0: i32) -> (i32, i32, i32) {
    %c0_i32 = arith.constant 0 : i32
    %c0_i32_0 = arith.constant 0 : i32
    %c0_i32_1 = arith.constant 0 : i32
    %c0_i32_2 = arith.constant 0 : i32
    return %c0_i32, %c0_i32_0, %c0_i32_1 : i32, i32, i32
  }
  func.func @transform_9(%arg0: i32) -> (i32, i32, i32) {
    %c0_i32 = arith.constant 0 : i32
    %c0_i32_0 = arith.constant 0 : i32
    %c0_i32_1 = arith.constant 0 : i32
    %c0_i32_2 = arith.constant 0 : i32
    return %c0_i32, %c0_i32_0, %c0_i32_1 : i32, i32, i32
  }
  func.func @transform_10(%arg0: i32) -> (i32, i32, i32) {
    %c0_i32 = arith.constant 0 : i32
    %c0_i32_0 = arith.constant 0 : i32
    %c0_i32_1 = arith.constant 0 : i32
    %c0_i32_2 = arith.constant 0 : i32
    return %c0_i32, %c0_i32_0, %c0_i32_1 : i32, i32, i32
  }
  func.func @transform_11(%arg0: i32) -> (i32, i32, i32) {
    %c0_i32 = arith.constant 0 : i32
    %c0_i32_0 = arith.constant 0 : i32
    %c0_i32_1 = arith.constant 0 : i32
    %c0_i32_2 = arith.constant 0 : i32
    return %c0_i32, %c0_i32_0, %c0_i32_1 : i32, i32, i32
  }
  func.func @transform_12(%arg0: i32) -> (i32, i32) {
    %c0_i32 = arith.constant 0 : i32
    %c0_i32_0 = arith.constant 0 : i32
    %c0_i32_1 = arith.constant 0 : i32
    return %c0_i32, %c0_i32_0 : i32, i32
  }
  func.func @transform_13(%arg0: i32) -> (i32, i32) {
    %c0_i32 = arith.constant 0 : i32
    %c0_i32_0 = arith.constant 0 : i32
    %c0_i32_1 = arith.constant 0 : i32
    return %c0_i32, %c0_i32_0 : i32, i32
  }
  func.func @transform_14(%arg0: i32) -> (i32, i32) {
    %c0_i32 = arith.constant 0 : i32
    %c0_i32_0 = arith.constant 0 : i32
    %c0_i32_1 = arith.constant 0 : i32
    return %c0_i32, %c0_i32_0 : i32, i32
  }
  func.func @transform_15(%arg0: i32) -> (i32, i32) {
    %c0_i32 = arith.constant 0 : i32
    %c0_i32_0 = arith.constant 0 : i32
    %c0_i32_1 = arith.constant 0 : i32
    return %c0_i32, %c0_i32_0 : i32, i32
  }
  func.func @transform_16(%arg0: i32) -> (i32, i32) {
    %c0_i32 = arith.constant 0 : i32
    %c0_i32_0 = arith.constant 0 : i32
    %c0_i32_1 = arith.constant 0 : i32
    return %c0_i32, %c0_i32_0 : i32, i32
  }
  func.func @transform_17(%arg0: i32) -> (i32, i32) {
    %c0_i32 = arith.constant 0 : i32
    %c0_i32_0 = arith.constant 0 : i32
    %c0_i32_1 = arith.constant 0 : i32
    return %c0_i32, %c0_i32_0 : i32, i32
  }
  func.func @transform_18(%arg0: i32) -> (i32, i32, i32, i32) {
    %c0_i32 = arith.constant 0 : i32
    %c0_i32_0 = arith.constant 0 : i32
    %c0_i32_1 = arith.constant 0 : i32
    %c0_i32_2 = arith.constant 0 : i32
    return %c0_i32, %arg0, %c0_i32_0, %c0_i32_1 : i32, i32, i32, i32
  }
}

</mosaic_0001>

<bundles_post_ra>
// kernel: tpu_custom_call.1
= control target key start
LH: loop header
LB: loop body
LE: loop exit
PB: predicated region body
PF: predicated region fallthrough
CT: control target
= control target key end

     0   :  { %s2760_s0 = inlined_call_operand.vmem [shape: f32[2,64,4], index: 0, kind: input, shape index: {}]   ;;  %s2761_s1 = inlined_call_operand.vmem [shape: bf16[4,128], index: 1, kind: input, shape index: {}]   ;;  %s2762_s2 = inlined_call_operand.vmem [shape: f32[64,128], index: 2, kind: input, shape index: {}]   ;;  %s2763_s3 = inlined_call_operand.vmem [shape: f32[8,32], index: 3, kind: input, shape index: {}]   ;;  %s2764_s4 = inlined_call_operand.vmem [shape: bf16[2,32,32], index: 4, kind: input, shape index: {}]   ;;  %s2765_s5 = inlined_call_operand.vmem [shape: f32[2,1,32], index: 5, kind: input, shape index: {}]   ;;  %s2766_s6 = inlined_call_operand.vmem [shape: bf16[2,32,32], index: 6, kind: input, shape index: {}]   ;;  %s2767_s7 = inlined_call_operand.vmem [shape: f32[2,1,32], index: 7, kind: input, shape index: {}]   ;;  %s2768_s8 = inlined_call_operand.vmem [shape: bf16[2,32,64], index: 8, kind: input, shape index: {}]   ;;  %s2769_s9 = inlined_call_operand.vmem [shape: f32[2,1,64], index: 9, kind: input, shape index: {}]   ;;  %s2770_s10 = inlined_call_operand.vmem [shape: bf16[2,64,32], index: 10, kind: input, shape index: {}]   ;;  %s2771_s11 = inlined_call_operand.vmem [shape: f32[2,1,32], index: 11, kind: input, shape index: {}]   ;;  %s2772_s12 = inlined_call_operand.vmem [shape: bf16[32,128], index: 12, kind: input, shape index: {}]   ;;  %s2773_s13 = inlined_call_operand.vmem [shape: f32[1,128], index: 13, kind: input, shape index: {}]   ;;  %s2774_s14 = inlined_call_operand.vmem [shape: bf16[32,32], index: 14, kind: input, shape index: {}]   ;;  %s2775_s15 = inlined_call_operand.vmem [shape: f32[1,32], index: 15, kind: input, shape index: {}]   ;;  %s2776_s16 = inlined_call_operand.vmem [shape: bf16[32,128], index: 16, kind: input, shape index: {}]   ;;  %s2777_s17 = inlined_call_operand.vmem [shape: f32[1,128], index: 17, kind: input, shape index: {}]   ;;  %s2778_s18 = inlined_call_operand.hbm [shape: f32[1,2,8,128], index: 18, kind: output, shape index: {}]  }
   0x1   :  { %2785 = sst [smem:[#allocation9_spill]] %s2760_s0 }
   0x2   :  { %2786 = sst [smem:[#allocation10_spill]] %s2761_s1 }
   0x3   :  { %2787 = sst [smem:[#allocation11_spill]] %s2762_s2 }
   0x4   :  { %2788 = sst [smem:[#allocation12_spill]] %s2763_s3 }
   0x5   :  { %2789 = sst [smem:[#allocation13_spill]] %s2764_s4 }
   0x6   :  { %23 = vsyncpa [#allocation3], 0 }
   0x7   :  { %25 = vsyncpa [#allocation3 + $0x1], 0  ;;  %s2376_s27 = smov 0   ;;  %s2378_s28 = smov 0  }
   0x8   :  { %s2380_s29 = smov 0   ;;  %s2382_s30 = smov 0  }
   0x9 LB: > { %2790 = sst [smem:[#allocation5_spill]] %s2269_s29  ;;  %s2397_s0 = sadd.s32 4294967295, %s2273_s30   ;;  %s2273_s30 = sphi %s2382_s30, %s2803_s30   ;;  %s2269_s29 = sphi %s2380_s29, %s2805_s29   ;;  %s2265_s28 = sphi %s2378_s28, %s2807_s28   ;;  %s2261_s27 = sphi %s2376_s27, %s2806_s27  }
   0xa   : > { %s1819_s19 = sadd.s32 4294967294, %s2273_s30   ;;  %s2401_s1 = sadd.s32 1, %s2273_s30  }
   0xb   : > { %2791 = sst [smem:[#allocation6_spill]] %s2401_s1  ;;  %s421_s20 = sadd.s32 1, %s2269_s29 }
   0xc   : > { %s418_s21 = ssub.s32 %s2273_s30, %s2401_s1  ;;  %p431_p0 = scmp.ne.s32.totalorder %s2269_s29, %s2265_s28 }
   0xd   : > { %p419_p1 = scmp.eq.s32.totalorder %s418_s21, 0  ;;  %p432_p2 = scmp.eq.s32.totalorder %s2397_s0, 1 }
   0xe   : > { %p437_p3 = scmp.ne.s32.totalorder %s2265_s28, %s2261_s27  ;;  %p438_p4 = scmp.eq.s32.totalorder %s1819_s19, 1 }
   0xf   : > { %s2412_s22 = scalar_select %p419_p1, %s2269_s29, %s421_s20  }
  0x10   : > { %p2414_p5 = por %p432_p2, %p431_p0  ;;  %p2418_p6 = por %p438_p4, %p437_p3 }
  0x11   : > { %2792 = sst [smem:[#allocation7_spill]] %s2412_s22  ;;  %p1822_p7 = scmp.ge.s32.totalorder %s2273_s30, 1 }
  0x12   : > { %s2794_s23 = scalar_select %p2418_p6, 1, 0 }
  0x13   : > { %p515_p8 = scmp.lt.s32.totalorder %s2273_s30, 3 }
  0x14   : > { %2795 = sst [smem:[#allocation8_spill]] %s2794_s23 }
  0x15   : > { %p516_p9 = pnand %p1822_p7, %p515_p8 }
  0x16   : > { %s2796_s26 = sld [smem:[#allocation10_spill]] (!%p516_p9)  ;;  %vm609_vm0 = vcmask (!%p516_p9), 1041408   ;;  %p569_p10 = scmp.lt.s32.totalorder (!%p516_p9), %s2397_s0, 1  ;;  %v2275_v2 = vmov (!%p516_p9), 0.0   ;;  %vm2276_vm1 = vmmov (!%p516_p9), 0   ;;  %vm596_vm2 = vcmask (!%p516_p9), 31744  }
  0x17   : > { %519 = sbr.rel (%p516_p9) target bundleno = 4103 (0x1007), region = 92  ;;  %1984 = vmatprep.subr.bf16.mxu1 (!%p516_p9), %v2275_v2  ;;  %s2797_s4 = sld [smem:[#allocation13_spill]] (!%p516_p9)  ;;  %1988 = vmatprep.mubr.msk.bf16.mxu1 (!%p516_p9), %vm2276_vm1, %v2275_v2  ;;  %vm706_vm3 = vcmask (!%p516_p9), 261120   ;;  %v1830_v54 = vld [vmem:[%s2765_s5] ss:$0 sm:$0xff] (!%p516_p9)  ;;  %vm810_vm4 = vcmask (!%p516_p9), 523264  }
  0x18   : > { %s2798_s3 = sld [smem:[#allocation12_spill]] (!%p516_p9)  ;;  %s2799_s1 = sld [smem:[#allocation9_spill]] (!%p516_p9) }
  0x19   : > { %s2800_s22 = sld [smem:[#allocation11_spill]] (!%p516_p9)  ;;  %s2784_s20 = smov (!%p516_p9), 96  }
  0x1c   : > { %v583_v0 = vld [vmem:[%s2796_s26] sm:$0x3] (!%p516_p9) }
  0x1d   : > { %2128 = vmatprep.subr.msk.bf16.mxu0 (!%p516_p9), %vm609_vm0, %v583_v0  ;;  %v611_v1 = vsel (!%p516_p9), %vm609_vm0, %v583_v0, 0  ;;  %v2173_v3 = vld [vmem:[%s2797_s4] sm:$0xff] (!%p516_p9)   ;;  %v2174_v4 = vld [vmem:[%s2797_s4 + $0x8] sm:$0xff] (!%p516_p9)  }
  0x1e   : > { %1975 = vmatpush3.bf16.msra.mxu0 %v611_v1  ;;  %s570_s21 = scalar_select %p569_p10, %s2397_s0, 1  ;;  %1985 = vmatpush3.bf16.msra.mxu1 %v2173_v3  ;;  %v2439_v5 = vld [vmem:[%s2798_s3] sm:$0xff] }
  0x1f   : > { %1992 = vmatprep.subr.bf16.mxu0 %v2275_v2  ;;  %1986 = vmatprep.subr.bf16.mxu1 %v2275_v2  ;;  %v686_v9 = vpack.c.bf16 %v2439_v5, %v2439_v5  ;;  %v590_v19 = vld [vmem:[%s2800_s22 + $0x10] sm:$0xff]  ;;  %v591_v21 = vld [vmem:[%s2800_s22 + $0x18] sm:$0xff]  ;;  %v588_v24 = vld [vmem:[%s2800_s22] sm:$0xff] }
  0x20   : > { %s1911_s26 = sshll.u32 %s570_s21, 6  ;;  %v589_v25 = vld [vmem:[%s2800_s22 + $0x8] sm:$0xff]  ;;  %v594_v37 = vld [vmem:[%s2800_s22 + $0x30] sm:$0xff]  ;;  %v592_v38 = vld [vmem:[%s2800_s22 + $0x20] sm:$0xff]  ;;  %s2277_s21 = smov 64  }
  0x21   : > { %s573_s23 = scalar_lea.vmem %s2799_s1, %s1911_s26  ;;  %v595_v41 = vld [vmem:[%s2800_s22 + $0x38] sm:$0xff]  ;;  %v593_v44 = vld [vmem:[%s2800_s22 + $0x28] sm:$0xff] }
  0x22   : > { %v575_v6 = vld [vmem:[%s573_s23] sm:$0xff]  ;;  %v576_v7 = vld [vmem:[%s573_s23 + $0x8] sm:$0xff]  ;;  %v577_v8 = vld [vmem:[%s573_s23 + $0x10] sm:$0xff]  ;;  %1987 = vmatpush3.bf16.msra.mxu1 %v2174_v4 }
  0x23   : > { %v584_v10 = vpack.c.bf16 %v576_v7, %v575_v6  ;;  %v578_v11 = vld [vmem:[%s573_s23 + $0x18] sm:$0xff]  ;;  %v579_v12 = vld [vmem:[%s573_s23 + $0x20] sm:$0xff]  ;;  %v580_v13 = vld [vmem:[%s573_s23 + $0x28] sm:$0xff]  ;;  %2004 = vmatprep.subr.bf16.mxu1 %v2275_v2 }
  0x24   : > { %v585_v14 = vpack.c.bf16 %v578_v11, %v577_v8  ;;  %v586_v15 = vpack.c.bf16 %v580_v13, %v579_v12  ;;  %v581_v16 = vld [vmem:[%s573_s23 + $0x30] sm:$0xff]  ;;  %v582_v17 = vld [vmem:[%s573_s23 + $0x38] sm:$0xff]  ;;  %s2279_s23 = smov 32   ;;  %v2175_v13 = vld [vmem:[%s2766_s6] sm:$0xff]  }
  0x25   : > { %1976 = vmatprep.mubr.msk.bf16.mxu0 %vm596_vm2, %v584_v10  ;;  %1989 = vmatmul.mubr.msk.bf16.vlgmr.msra.gmra.mrb[0].mxu1 %vm706_vm3, %v686_v9  ;;  %v587_v18 = vpack.c.bf16 %v582_v17, %v581_v16  ;;  %v2177_v17 = vld [vmem:[%s2768_s8] sm:$0xff]  }
  0x26   : > { %1977 = vmatmul.mubr.msk.bf16.vlgmr.msra.gmra.mrb[0].mxu0 %vm596_vm2, %v585_v14  ;;  %2012 = vmatprep.mubr.msk.bf16.mxu1 %vm2276_vm1, %v2275_v2 }
  0x27   : > { %1980 = vmatprep.mubr.msk.bf16.mxu0 %vm596_vm2, %v586_v15  ;;  %v2176_v15 = vld [vmem:[%s2766_s6 + $0x8] sm:$0xff]  }
  0x2e   : > { %1981 = vmatmul.mubr.msk.bf16.gmra.mrb[4].mxu0 %vm596_vm2, %v587_v18 }
  0x2f   : > { %2000 = vmatprep.mubr.msk.bf16.mxu0 %vm2276_vm1, %v2275_v2 }
  0xf8   : > { %v744_v22 = vpop.f32.mrb[0].mxu1 }
  0xf9   : > { %v1978_v20 = vpop.f32.mrb[0].mxu0  ;;  %v1990_v26 = vpop.f32.mrb[1].mxu1  ;;  %v745_v55 = vadd.f32 %v1830_v54, %v744_v22  ;;  %v2178_v22 = vld [vmem:[%s2768_s8 + $0x8] sm:$0xff]  }
  0xfa   : > { %v647_v23 = vpop.f32.mrb[1].mxu0  ;;  %v747_v28 = vpop.f32.mrb[2].mxu1  ;;  %v656_v29 = vadd.f32 %v1978_v20, %v590_v19  ;;  %v1836_v26 = vld [vmem:[%s2767_s7] ss:$0 sm:$0xff] }
  0xfb   : > { %v1979_v27 = vpop.f32.mrb[2].mxu0  ;;  %v1991_v32 = vpop.f32.mrb[3].mxu1  ;;  %v648_v33 = vadd.f32 %v647_v23, %v588_v24  ;;  %v750_v57 = vpack.c.bf16 %v745_v55, %v745_v55  ;;  %v2179_v23 = vld [vmem:[%s2770_s10] sm:$0xff]   ;;  %v2180_v24 = vld [vmem:[%s2770_s10 + $0x8] sm:$0xff]  }
  0xfc   : > { %v659_v30 = vadd.f32 %v1979_v27, %v591_v21  ;;  %v650_v31 = vpop.f32.mrb[3].mxu0 }
  0xfd   : > { %v651_v34 = vadd.f32 %v650_v31, %v589_v25  ;;  %v2181_v25 = vld [vmem:[%s2770_s10 + $0x10] sm:$0xff]  }
  0xfe   : > { %v2472_v35 = vpack.c.bf16 %v659_v30, %v656_v29 }
  0xff   : > { %v751_v36 = vpack.c.bf16 %v651_v34, %v648_v33  ;;  %v2182_v33 = vld [vmem:[%s2770_s10 + $0x18] sm:$0xff]   ;;  %v2183_v34 = vld [vmem:[%s2797_s4 + $0x10] sm:$0xff]  }
 0x100   : > { %v762_v52 = vsel %vm706_vm3, %v2472_v35, 0 }
 0x101   : > { %827 = vrot.lane.b32.xlu1 %v751_v36, %s2277_s21  ;;  %v1982_v39 = vpop.f32.mrb[4].mxu0  ;;  %v759_v40 = vsel %vm706_vm3, %v751_v36, 0 }
 0x102   : > { %v672_v42 = vadd.f32 %v1982_v39, %v594_v37  ;;  %1993 = vmatpush3.bf16.xpose.msra.mxu0 %v759_v40  ;;  %v663_v43 = vpop.f32.mrb[5].mxu0 }
 0x103   : > { %v664_v45 = vadd.f32 %v663_v43, %v592_v38  ;;  %v1983_v46 = vpop.f32.mrb[6].mxu0  ;;  %1994 = vmatprep.subr.bf16.mxu0 %v2275_v2 }
 0x104   : > { %v675_v47 = vadd.f32 %v1983_v46, %v595_v41  ;;  %v666_v48 = vpop.f32.mrb[7].mxu0 }
 0x105   : > { %829 = vrot.lane.b32.xlu1 %v2472_v35, %s2277_s21  ;;  %v667_v49 = vadd.f32 %v666_v48, %v593_v44 }
 0x106   : > { %v2491_v50 = vpack.c.bf16 %v675_v47, %v672_v42  ;;  %v1849_v47 = vld [vmem:[%s2771_s11] ss:$0 sm:$0xff] }
 0x107   : > { %v2493_v51 = vpack.c.bf16 %v667_v49, %v664_v45  ;;  %v2184_v45 = vld [vmem:[%s2797_s4 + $0x18] sm:$0xff]  }
 0x108   : > { %v768_v56 = vsel %vm706_vm3, %v2491_v50, 0 }
 0x109   : > { %833 = vrot.lane.b32.xlu1 %v2491_v50, %s2277_s21  ;;  %v765_v53 = vsel %vm706_vm3, %v2493_v51, 0 }
 0x10a   : > { %1995 = vmatpush3.bf16.xpose.msra.mxu0 %v762_v52 }
 0x10b   : > { %1996 = vmatprep.subr.bf16.mxu0 %v2275_v2 }
 0x10d   : > { %1173 = vrot.lane.b32.xlu1 %v751_v36, %s2784_s20 }
 0x111   : > { %1175 = vrot.lane.b32.xlu1 %v2472_v35, %s2784_s20 }
 0x112   : > { %1997 = vmatpush3.bf16.xpose.msra.mxu0 %v765_v53 }
 0x113   : > { %1998 = vmatprep.subr.bf16.mxu0 %v2275_v2 }
 0x115   : > { %1177 = vrot.lane.b32.xlu1 %v2493_v51, %s2784_s20 }
 0x119   : > { %1179 = vrot.lane.b32.xlu1 %v2491_v50, %s2784_s20  ;;  %s566_s20 = sand.u32 1, %s2265_s28  }
 0x11a   : > { %1999 = vmatpush3.bf16.xpose.msra.mxu0 %v768_v56  ;;  %s1823_s25 = sshll.u32 %s566_s20, 3 }
 0x11b   : > { %2032 = vmatprep.subr.bf16.mxu0 %v2275_v2  ;;  %s568_s26 = scalar_lea.vmem [#allocation2], %s1823_s25 }
 0x11c   : > { %s1760_s19 = sshll.u32 %s568_s26, 4  ;;  %s2720_s19 = int_to_ptr.vmem [resolvable:$true] %s1760_s19 }
 0x11d   : > { %s2211_s3 = scalar_lea.vmem %s2720_s19, 128 }
 0x11e   : > { %p2212_p11 = scmp.ne.s32.totalorder %s2720_s19, %s2211_s3 }
 0x120   : > { %p2213_p12 = pnand %p2212_p11, %p2414_p5 }
 0x121   : > { %2001 = vmatmul.mubr.msk.bf16.vlgmr.msra.gmra.mrb[8].mxu0 %vm706_vm3, %v750_v57 }
 0x122   : > { %2040 = vmatprep.mubr.msk.bf16.mxu0 %vm2276_vm1, %v2275_v2  ;;  %2033 = vmatpush3.bf16.msra.mxu0 %v2179_v23  ;;  %v2185_v23 = vld [vmem:[%s2766_s6 + $0x10] sm:$0xff]   ;;  %p2214_p13 = pneg %p2213_p12 }
 0x123   : > { %2034 = vmatprep.subr.bf16.mxu0 %v2275_v2 }
 0x126   : > { %2035 = vmatpush3.bf16.msra.mxu0 %v2180_v24 }
 0x127   : > { %2036 = vmatprep.subr.bf16.mxu0 %v2275_v2 }
 0x12a   : > { %2037 = vmatpush3.bf16.msra.mxu0 %v2181_v25 }
 0x12b   : > { %2038 = vmatprep.subr.bf16.mxu0 %v2275_v2 }
 0x12e   : > { %2039 = vmatpush3.bf16.msra.mxu0 %v2182_v33  ;;  %v2190_v33 = vld [vmem:[%s2770_s10 + $0x28] sm:$0xff]  }
 0x12f   : > { %2064 = vmatprep.subr.bf16.mxu0 %v2275_v2 }
 0x173   : > { %v828_v58 = vpop.permute.xlu1 %827 }
 0x174   : > { %2005 = vmatpush3.bf16.msra.mxu1 %v828_v58 }
 0x175   : > { %2006 = vmatprep.subr.bf16.mxu1 %v2275_v2 }
 0x177   : > { %v830_v59 = vpop.permute.xlu1 %829 }
 0x178   : > { %2007 = vmatpush3.bf16.msra.mxu1 %v830_v59 }
 0x179   : > { %2008 = vmatprep.subr.bf16.mxu1 %v2275_v2 }
 0x17b   : > { %v834_v10 = vpop.permute.xlu1 %833 }
 0x17f   : > { %v1174_v56 = vpop.permute.xlu1 %1173 }
 0x180   : > { %v1185_v58 = vsel %vm706_vm3, %v1174_v56, 0  ;;  %v2194_v56 = vld [vmem:[%s2772_s12 + $0x8] sm:$0xff]  }
 0x183   : > { %v1176_v59 = vpop.permute.xlu1 %1175 }
 0x1f4   : > { %v804_v60 = vpop.f32.mrb[8].mxu0 }
 0x1f5   : > { %v2002_v61 = vpop.f32.mrb[9].mxu0  ;;  %v811_v62 = vsel %vm810_vm4, %v804_v60, -inf }
 0x1f6   : > { %812 = vmax.xlane.f32.xlu0 %v811_v62  ;;  %v807_v63 = vpop.f32.mrb[10].mxu0  ;;  %v1178_v61 = vpop.permute.xlu1 %1177 }
 0x1f7   : > { %v2003_v0 = vpop.f32.mrb[11].mxu0 }
 0x1f8   : > { %v1855_v0 = vld [vmem:[%s2765_s5 + $0x1] ss:$0 sm:$0xff] }
 0x1fa   : > { %v1180_v62 = vpop.permute.xlu1 %1179 }
 0x1fb   : > { %v1194_v63 = vsel %vm706_vm3, %v1180_v62, 0 }
 0x283   : > { %v813_v1 = vpop.xlane.xlu0 %812 }
 0x284   : > { %v814_v3 = vsub.f32 %v804_v60, %v813_v1  ;;  %v1188_v60 = vsel %vm706_vm3, %v1176_v59, 0 }
 0x286   : > { %v815_v4 = vmul.f32 1.442695, %v814_v3 }
 0x288   : > { %2199 = vpow2.f32 %v815_v4 }
 0x292   : > { %v2200_v6 = vpop.eup %2199 }
 0x293   : > { %v817_v7 = vsel %vm810_vm4, %v2200_v6, 0.0 }
 0x294   : > { %818 = vadd.xlane.f32.xlu0 %v817_v7 }
 0x2aa   : > { %831 = vrot.lane.b32.xlu0 %v2493_v51, %s2277_s21  ;;  %s2801_s21 = smov 96  }
 0x2ae   : > { %1248 = vrot.lane.b32.xlu0 %v751_v36, %s2279_s23  ;;  %v1840_v36 = vld [vmem:[%s2769_s9] ss:$0 sm:$0xff] }
 0x321   : > { %v819_v8 = vpop.xlane.xlu0 %818 }
 0x322   : > { %2201 = vrcp.f32 %v819_v8 }
 0x325   : > { %v832_v9 = vpop.permute.xlu0 %831 }
 0x326   : > { %2009 = vmatpush3.bf16.msra.mxu1 %v832_v9 }
 0x327   : > { %2010 = vmatprep.subr.bf16.mxu1 %v2275_v2 }
 0x329   : > { %v1249_v44 = vpop.permute.xlu0 %1248 }
 0x32a   : > { %2011 = vmatpush3.bf16.msra.mxu1 %v834_v10 }
 0x32b   : > { %2016 = vmatprep.subr.bf16.mxu1 %v2275_v2 }
 0x32c   : > { %v2202_v11 = vpop.eup %2201 }
 0x32d   : > { %v821_v12 = vmul.f32 %v2202_v11, %v2200_v6 }
 0x32f   : > { %v822_v14 = vpack.c.bf16 %v821_v12, %v821_v12 }
 0x331   : > { %2013 = vmatmul.mubr.msk.bf16.vlgmr.msra.gmra.mrb[4].mxu1 %vm810_vm4, %v822_v14 }
 0x332   : > { %2017 = vmatpush3.bf16.msra.mxu1 %v2175_v13  ;;  %2020 = vmatprep.mubr.msk.bf16.mxu1 %vm2276_vm1, %v2275_v2 }
 0x333   : > { %2018 = vmatprep.subr.bf16.mxu1 %v2275_v2 }
 0x336   : > { %2019 = vmatpush3.bf16.msra.mxu1 %v2176_v15 }
 0x337   : > { %2024 = vmatprep.subr.bf16.mxu1 %v2275_v2 }
 0x404   : > { %v876_v16 = vpop.f32.mrb[4].mxu1 }
 0x405   : > { %v886_v18 = vpack.c.bf16 %v876_v16, %v876_v16  ;;  %v2014_v19 = vpop.f32.mrb[5].mxu1 }
 0x406   : > { %v879_v20 = vpop.f32.mrb[6].mxu1 }
 0x407   : > { %v2015_v21 = vpop.f32.mrb[7].mxu1  ;;  %2021 = vmatmul.mubr.msk.bf16.vlgmr.msra.gmra.mrb[8].mxu1 %vm706_vm3, %v886_v18 }
 0x408   : > { %2025 = vmatpush3.bf16.msra.mxu1 %v2177_v17  ;;  %2028 = vmatprep.mubr.msk.bf16.mxu1 %vm2276_vm1, %v2275_v2 }
 0x409   : > { %2026 = vmatprep.subr.bf16.mxu1 %v2275_v2 }
 0x40c   : > { %2027 = vmatpush3.bf16.msra.mxu1 %v2178_v22 }
 0x40d   : > { %2044 = vmatprep.subr.bf16.mxu1 %v2275_v2 }
 0x4da   : > { %v943_v27 = vpop.f32.mrb[8].mxu1 }
 0x4db   : > { %v944_v28 = vadd.f32 %v1836_v26, %v943_v27  ;;  %v2022_v29 = vpop.f32.mrb[9].mxu1  ;;  %v2187_v26 = vld [vmem:[%s2768_s8 + $0x10] sm:$0xff]  }
 0x4dc   : > { %v946_v30 = vpop.f32.mrb[10].mxu1 }
 0x4dd   : > { %v953_v31 = vpack.c.bf16 %v944_v28, %v944_v28  ;;  %v2023_v32 = vpop.f32.mrb[11].mxu1 }
 0x4de   : > { %v2189_v32 = vld [vmem:[%s2770_s10 + $0x20] sm:$0xff]  }
 0x4df   : > { %2029 = vmatmul.mubr.msk.bf16.vlgmr.msra.gmra.mrb[12].mxu1 %vm706_vm3, %v953_v31  ;;  %v2188_v31 = vld [vmem:[%s2768_s8 + $0x18] sm:$0xff]  }
 0x4e0   : > { %2048 = vmatprep.mubr.msk.bf16.mxu1 %vm2276_vm1, %v2275_v2  ;;  %2045 = vmatpush3.bf16.msra.mxu1 %v2183_v34 }
 0x4e1   : > { %2046 = vmatprep.subr.bf16.mxu1 %v2275_v2 }
 0x4e4   : > { %2047 = vmatpush3.bf16.msra.mxu1 %v2184_v45  ;;  %v2193_v45 = vld [vmem:[%s2772_s12] sm:$0xff]  }
 0x4e5   : > { %2052 = vmatprep.subr.bf16.mxu1 %v2275_v2 }
 0x5b2   : > { %v1010_v37 = vpop.f32.mrb[12].mxu1 }
 0x5b3   : > { %v1011_v38 = vadd.f32 %v1840_v36, %v1010_v37  ;;  %v2030_v39 = vpop.f32.mrb[13].mxu1  ;;  %v1869_v36 = vld [vmem:[%s2767_s7 + $0x1] ss:$0 sm:$0xff] }
 0x5b4   : > { %v1013_v40 = vpop.f32.mrb[14].mxu1 }
 0x5b5   : > { %v1016_v41 = vmax.f32 %v1011_v38, 0.0  ;;  %v2031_v42 = vpop.f32.mrb[15].mxu1 }
 0x5b7   : > { %v1025_v43 = vpack.c.bf16 %v1016_v41, %v1016_v41 }
 0x5b9   : > { %2041 = vmatmul.mubr.msk.bf16.vlgmr.msra.gmra.mrb[12].mxu0 %vm810_vm4, %v1025_v43  ;;  %v2191_v43 = vld [vmem:[%s2770_s10 + $0x30] sm:$0xff]  }
 0x5ba   : > { %2065 = vmatpush3.bf16.msra.mxu0 %v1249_v44  ;;  %2072 = vmatprep.mubr.msk.bf16.mxu0 %vm2276_vm1, %v2275_v2  ;;  %v2192_v44 = vld [vmem:[%s2770_s10 + $0x38] sm:$0xff]  }
 0x5bb   : > { %2066 = vmatprep.subr.bf16.mxu0 %v2275_v2 }
 0x68c   : > { %v1087_v46 = vpop.f32.mrb[12].mxu0 }
 0x68d   : > { %v1093_v48 = vadd.f32 %v1087_v46, %v944_v28  ;;  %v2042_v49 = vpop.f32.mrb[13].mxu0  ;;  %v1875_v46 = vld [vmem:[%s2769_s9 + $0x1] ss:$0 sm:$0xff] }
 0x68e   : > { %v1090_v52 = vpop.f32.mrb[14].mxu0 }
 0x68f   : > { %v2590_v53 = vadd.f32 %v1849_v47, %v1093_v48  ;;  %v2043_v54 = vpop.f32.mrb[15].mxu0 }
 0x691   : > { %v1102_v55 = vadd.f32 %v2590_v53, %v2439_v5  ;;  %v1191_v5 = vsel %vm706_vm3, %v1178_v61, 0 }
 0x693   : > { %v1108_v57 = vpack.c.bf16 %v1102_v55, %v1102_v55 }
 0x695   : > { %2049 = vmatmul.mubr.msk.bf16.vlgmr.msra.gmra.mrb[16].mxu1 %vm706_vm3, %v1108_v57 }
 0x696   : > { %2053 = vmatpush3.bf16.xpose.msra.mxu1 %v1185_v58  ;;  %2060 = vmatprep.mubr.msk.bf16.mxu1 %vm2276_vm1, %v2275_v2  ;;  %v1893_v58 = vld [vmem:[%s2771_s11 + $0x1] ss:$0 sm:$0xff] }
 0x697   : > { %2054 = vmatprep.subr.bf16.mxu1 %v2275_v2 }
 0x69e   : > { %2055 = vmatpush3.bf16.xpose.msra.mxu1 %v1188_v60 }
 0x69f   : > { %2056 = vmatprep.subr.bf16.mxu1 %v2275_v2 }
 0x6a6   : > { %2057 = vmatpush3.bf16.xpose.msra.mxu1 %v1191_v5 }
 0x6a7   : > { %2058 = vmatprep.subr.bf16.mxu1 %v2275_v2 }
 0x6ae   : > { %2059 = vmatpush3.bf16.xpose.msra.mxu1 %v1194_v63 }
 0x6af   : > { %2092 = vmatprep.subr.bf16.mxu1 %v2275_v2 }
 0x768   : > { %v1166_v1 = vpop.f32.mrb[16].mxu1 }
 0x769   : > { %v1167_v3 = vadd.f32 %v1855_v0, %v1166_v1  ;;  %v2050_v4 = vpop.f32.mrb[17].mxu1  ;;  %v2195_v0 = vld [vmem:[%s2774_s14] sm:$0xff]   ;;  %v2196_v1 = vld [vmem:[%s2774_s14 + $0x8] sm:$0xff]  }
 0x76a   : > { %v1169_v6 = vpop.f32.mrb[18].mxu1  ;;  %v1894_v4 = vld [vmem:[%s2773_s13] ss:$0 sm:$0xff] }
 0x76b   : > { %v1172_v7 = vpack.c.bf16 %v1167_v3, %v1167_v3  ;;  %v2051_v8 = vpop.f32.mrb[19].mxu1  ;;  %v2197_v3 = vld [vmem:[%s2776_s16] sm:$0xff]  }
 0x76d   : > { %2061 = vmatmul.mubr.msk.bf16.vlgmr.msra.gmra.mrb[20].mxu1 %vm706_vm3, %v1172_v7 }
 0x76e   : > { %2100 = vmatprep.mubr.msk.bf16.mxu1 %vm2276_vm1, %v2275_v2  ;;  %2093 = vmatpush3.bf16.msra.mxu1 %v2189_v32 }
 0x76f   : > { %2094 = vmatprep.subr.bf16.mxu1 %v2275_v2 }
 0x772   : > { %2095 = vmatpush3.bf16.msra.mxu1 %v2190_v33 }
 0x773   : > { %2096 = vmatprep.subr.bf16.mxu1 %v2275_v2 }
 0x776   : > { %2097 = vmatpush3.bf16.msra.mxu1 %v2191_v43 }
 0x777   : > { %2098 = vmatprep.subr.bf16.mxu1 %v2275_v2 }
 0x77a   : > { %2099 = vmatpush3.bf16.msra.mxu1 %v2192_v44 }
 0x77b   : > { %2120 = vmatprep.subr.bf16.mxu1 %v2275_v2 }
 0x840   : > { %v1230_v9 = vpop.f32.mrb[20].mxu1 }
 0x841   : > { %v2062_v10 = vpop.f32.mrb[21].mxu1  ;;  %v1236_v11 = vsel %vm810_vm4, %v1230_v9, -inf }
 0x842   : > { %1237 = vmax.xlane.f32.xlu1 %v1236_v11  ;;  %v1233_v12 = vpop.f32.mrb[22].mxu1 }
 0x843   : > { %v2063_v13 = vpop.f32.mrb[23].mxu1 }
 0x853   : > { %1250 = vrot.lane.b32.xlu1 %v2472_v35, %s2279_s23 }
 0x857   : > { %1252 = vrot.lane.b32.xlu1 %v2493_v51, %s2279_s23 }
 0x8cf   : > { %v1238_v14 = vpop.xlane.xlu1 %1237 }
 0x8d0   : > { %v1239_v15 = vsub.f32 %v1230_v9, %v1238_v14  ;;  %v1898_v14 = vld [vmem:[%s2775_s15] ss:$0 sm:$0xff] }
 0x8d2   : > { %v1240_v16 = vmul.f32 1.442695, %v1239_v15 }
 0x8d3   : > { %v1251_v17 = vpop.permute.xlu1 %1250 }
 0x8d4   : > { %2203 = vpow2.f32 %v1240_v16  ;;  %2067 = vmatpush3.bf16.msra.mxu0 %v1251_v17 }
 0x8d5   : > { %2068 = vmatprep.subr.bf16.mxu0 %v2275_v2 }
 0x8d7   : > { %v1253_v18 = vpop.permute.xlu1 %1252 }
 0x8d8   : > { %2069 = vmatpush3.bf16.msra.mxu0 %v1253_v18 }
 0x8d9   : > { %2070 = vmatprep.subr.bf16.mxu0 %v2275_v2 }
 0x8de   : > { %v2204_v19 = vpop.eup %2203 }
 0x8df   : > { %v1242_v20 = vsel %vm810_vm4, %v2204_v19, 0.0 }
 0x8e0   : > { %1243 = vadd.xlane.f32.xlu0 %v1242_v20 }
 0x8f6   : > { %1254 = vrot.lane.b32.xlu0 %v2491_v50, %s2279_s23  ;;  %v2186_v50 = vld [vmem:[%s2766_s6 + $0x18] sm:$0xff]   ;;  %s1747_s23 = scalar_lea.sflag [#allocation3], %s566_s20 }
 0x96d   : > { %v1244_v35 = vpop.xlane.xlu0 %1243 }
 0x96e   : > { %2205 = vrcp.f32 %v1244_v35 }
 0x971   : > { %v1255_v51 = vpop.permute.xlu0 %1254 }
 0x972   : > { %2071 = vmatpush3.bf16.msra.mxu0 %v1255_v51  ;;  %v1902_v51 = vld [vmem:[%s2777_s17] ss:$0 sm:$0xff] }
 0x973   : > { %2076 = vmatprep.subr.bf16.mxu0 %v2275_v2 }
 0x978   : > { %v2206_v21 = vpop.eup %2205 }
 0x979   : > { %v1246_v22 = vmul.f32 %v2206_v21, %v2204_v19 }
 0x97b   : > { %v1247_v24 = vpack.c.bf16 %v1246_v22, %v1246_v22 }
 0x97d   : > { %2073 = vmatmul.mubr.msk.bf16.vlgmr.msra.gmra.mrb[16].mxu0 %vm810_vm4, %v1247_v24 }
 0x97e   : > { %2077 = vmatpush3.bf16.msra.mxu0 %v2185_v23  ;;  %2080 = vmatprep.mubr.msk.bf16.mxu0 %vm2276_vm1, %v2275_v2 }
 0x97f   : > { %2078 = vmatprep.subr.bf16.mxu0 %v2275_v2 }
 0x982   : > { %2079 = vmatpush3.bf16.msra.mxu0 %v2186_v50 }
 0x983   : > { %2084 = vmatprep.subr.bf16.mxu0 %v2275_v2 }
 0xa50   : > { %v1297_v25 = vpop.f32.mrb[16].mxu0 }
 0xa51   : > { %v1308_v27 = vpack.c.bf16 %v1297_v25, %v1297_v25  ;;  %v2074_v28 = vpop.f32.mrb[17].mxu0 }
 0xa52   : > { %v1300_v29 = vpop.f32.mrb[18].mxu0  ;;  %v679_v28 = vlaneseq }
 0xa53   : > { %v2075_v30 = vpop.f32.mrb[19].mxu0  ;;  %2081 = vmatmul.mubr.msk.bf16.vlgmr.msra.gmra.mrb[20].mxu0 %vm706_vm3, %v1308_v27 }
 0xa54   : > { %2085 = vmatpush3.bf16.msra.mxu0 %v2187_v26  ;;  %2088 = vmatprep.mubr.msk.bf16.mxu0 %vm2276_vm1, %v2275_v2  ;;  %v680_v29 = vand.u32 127, %v679_v28 }
 0xa55   : > { %2086 = vmatprep.subr.bf16.mxu0 %v2275_v2 }
 0xa56   : > { %vm1743_vm5 = vcmp.lt.s32.totalorder %v680_v29, 8 }
 0xa58   : > { %2087 = vmatpush3.bf16.msra.mxu0 %v2188_v31 }
 0xa59   : > { %2104 = vmatprep.subr.bf16.mxu0 %v2275_v2 }
 0xb26   : > { %v1358_v34 = vpop.f32.mrb[20].mxu0 }
 0xb27   : > { %v1364_v37 = vadd.f32 %v1358_v34, %v2590_v53  ;;  %v2082_v38 = vpop.f32.mrb[21].mxu0 }
 0xb28   : > { %v1361_v39 = vpop.f32.mrb[22].mxu0 }
 0xb29   : > { %v1373_v40 = vadd.f32 %v1869_v36, %v1364_v37  ;;  %v2083_v41 = vpop.f32.mrb[23].mxu0 }
 0xb2b   : > { %v1379_v42 = vpack.c.bf16 %v1373_v40, %v1373_v40 }
 0xb2d   : > { %2089 = vmatmul.mubr.msk.bf16.vlgmr.msra.gmra.mrb[24].mxu0 %vm706_vm3, %v1379_v42 }
 0xb2e   : > { %2108 = vmatprep.mubr.msk.bf16.mxu0 %vm2276_vm1, %v2275_v2  ;;  %2105 = vmatpush3.bf16.msra.mxu0 %v2193_v45 }
 0xb2f   : > { %2106 = vmatprep.subr.bf16.mxu0 %v2275_v2 }
 0xb32   : > { %2107 = vmatpush3.bf16.msra.mxu0 %v2194_v56 }
 0xb33   : > { %2112 = vmatprep.subr.bf16.mxu0 %v2275_v2 }
 0xc00   : > { %v1437_v47 = vpop.f32.mrb[24].mxu0 }
 0xc01   : > { %v1438_v48 = vadd.f32 %v1875_v46, %v1437_v47  ;;  %v2090_v49 = vpop.f32.mrb[25].mxu0 }
 0xc02   : > { %v1440_v52 = vpop.f32.mrb[26].mxu0 }
 0xc03   : > { %v1443_v53 = vmax.f32 %v1438_v48, 0.0  ;;  %v2091_v54 = vpop.f32.mrb[27].mxu0 }
 0xc05   : > { %v1453_v55 = vpack.c.bf16 %v1443_v53, %v1443_v53 }
 0xc07   : > { %2101 = vmatmul.mubr.msk.bf16.vlgmr.msra.gmra.mrb[24].mxu1 %vm810_vm4, %v1453_v55 }
 0xc08   : > { %2124 = vmatprep.mubr.msk.bf16.mxu1 %vm2276_vm1, %v2275_v2  ;;  %2121 = vmatpush3.bf16.msra.mxu1 %v2197_v3 }
 0xc09   : > { %2122 = vmatprep.subr.bf16.mxu1 %v2275_v2 }
 0xcda   : > { %v1515_v57 = vpop.f32.mrb[24].mxu1 }
 0xcdb   : > { %v1521_v59 = vadd.f32 %v1515_v57, %v1373_v40  ;;  %v2102_v60 = vpop.f32.mrb[25].mxu1 }
 0xcdc   : > { %v1518_v61 = vpop.f32.mrb[26].mxu1 }
 0xcdd   : > { %v1530_v5 = vadd.f32 %v1893_v58, %v1521_v59  ;;  %v2103_v62 = vpop.f32.mrb[27].mxu1 }
 0xcdf   : > { %v1535_v63 = vpack.c.bf16 %v1530_v5, %v1530_v5 }
 0xce1   : > { %2109 = vmatmul.mubr.msk.bf16.vlgmr.msra.gmra.mrb[28].mxu0 %vm706_vm3, %v1535_v63 }
 0xce2   : > { %2116 = vmatprep.mubr.msk.bf16.mxu0 %vm2276_vm1, %v2275_v2  ;;  %2113 = vmatpush3.bf16.msra.mxu0 %v2195_v0 }
 0xce3   : > { %2114 = vmatprep.subr.bf16.mxu0 %v2275_v2  ;;  %v2198_v2 = vld [vmem:[%s2776_s16 + $0x8] sm:$0xff]  }
 0xce4   : > { %2123 = vmatpush3.bf16.msra.mxu1 %v2198_v2 }
 0xce6   : > { %2115 = vmatpush3.bf16.msra.mxu0 %v2196_v1 }
 0xdb4   : > { %v1592_v6 = vpop.f32.mrb[28].mxu0 }
 0xdb5   : > { %v1593_v7 = vadd.f32 %v1894_v4, %v1592_v6  ;;  %v2110_v8 = vpop.f32.mrb[29].mxu0 }
 0xdb6   : > { %v1595_v9 = vpop.f32.mrb[30].mxu0 }
 0xdb7   : > { %v1598_v10 = vmax.f32 %v1593_v7, 0.0  ;;  %v2111_v11 = vpop.f32.mrb[31].mxu0 }
 0xdb9   : > { %v1603_v12 = vpack.c.bf16 %v1598_v10, %v1598_v10 }
 0xdbb   : > { %1612 = vrot.lane.b32.xlu1 %v1603_v12, %s2801_s21  ;;  %s1908_s21 = sshll.u32 %s2397_s0, 7  ;;  %s2280_s0 = smov [#allocation2]  }
 0xdbc   : > { %s2718_s24 = scalar_lea.hbm %s2778_s18, %s1908_s21  ;;  %s2215_s25 = sshll.u32 %s2280_s0, 4  ;;  %s2216_s25 = int_to_ptr.vmem [resolvable:$false] %s2215_s25 }
 0xdbd   : > { %s2217_s4 = scalar_lea.vmem %s2216_s25, 256  ;;  %p2218_p0 = scmp.lt.s32.totalorder %s2720_s19, %s2216_s25 }
 0xdbe   : > { %p2219_p1 = scmp.lt.s32.totalorder %s2217_s4, %s2211_s3 }
 0xdc0   : > { %p2220_p2 = por %p2219_p1, %p2218_p0 }
 0xdc2   : > { %p2221_p3 = pnand %p2220_p2, %p2214_p13 }
 0xe2d   : > { %v1613_v13 = vpop.permute.xlu1 %1612 }
 0xe2e   : > { %2117 = vmatmul.mubr.msk.bf16.vlgmr.msra.gmra.mrb[32].mxu0 %vm706_vm3, %v1613_v13 }
 0xf01   : > { %v1663_v15 = vpop.f32.mrb[32].mxu0 }
 0xf02   : > { %v1664_v16 = vadd.f32 %v1898_v14, %v1663_v15  ;;  %v2118_v17 = vpop.f32.mrb[33].mxu0 }
 0xf03   : > { %v1666_v18 = vpop.f32.mrb[34].mxu0 }
 0xf04   : > { %v1669_v19 = vmax.f32 %v1664_v16, 0.0  ;;  %v2119_v20 = vpop.f32.mrb[35].mxu0 }
 0xf06   : > { %v1674_v35 = vpack.c.bf16 %v1669_v19, %v1669_v19 }
 0xf08   : > { %2125 = vmatmul.mubr.msk.bf16.vlgmr.msra.gmra.mrb[28].mxu1 %vm706_vm3, %v1674_v35 }
 0xfdb   : > { %v1731_v21 = vpop.f32.mrb[28].mxu1 }
 0xfdc   : > { %v1732_v22 = vadd.f32 %v1902_v51, %v1731_v21  ;;  %v2126_v23 = vpop.f32.mrb[29].mxu1 }
 0xfdd   : > { %v1734_v24 = vpop.f32.mrb[30].mxu1 }
 0xfde   : > { %v1906_v50 = vmul.f32 -1.442695, %v1732_v22  ;;  %v2127_v25 = vpop.f32.mrb[31].mxu1 }
 0xfe0   : > { %2207 = vpow2.f32 %v1906_v50 }
 0xfea   : > { %v2208_v26 = vpop.eup %2207 }
 0xfeb   : > { %v1740_v27 = vadd.f32 1.0, %v2208_v26 }
 0xfed   : > { %2209 = vrcp.f32 %v1740_v27 }
 0xff7   : > { %v2210_v30 = vpop.eup %2209 }
 0xff8   : > { %v1744_v31 = vsel %vm1743_vm5, %v1593_v7, %v2210_v30 }
 0xff9   : > { %1745 = vst [vmem:[%s568_s26] sm:$0xff] %v1744_v31 }
 0xffa   : > { %2224 = shalt.err (!%p2221_p3)
}
 0xffb   : > { %s2225_s20 = scalar_lea.hbm %s2718_s24, 128  ;;  %s2229_s29 = scalar_lea.hbm %s2778_s18, 256 }
 0xffc   : > { %p2226_p4 = scmp.ne.s32.totalorder %s2718_s24, %s2225_s20  ;;  %p2230_p9 = scmp.lt.u32.totalorder %s2718_s24, %s2778_s18 }
 0xffd   : > { %p2231_p10 = scmp.lt.u32.totalorder %s2229_s29, %s2225_s20  ;;  %p2233_p12 = scmp.lt.u32.totalorder %s2225_s20, %s2718_s24 }
 0xffe   : > { %p2227_p7 = pnand %p2226_p4, %p2414_p5 }
 0xfff   : > { %p2232_p11 = por %p2231_p10, %p2230_p9 }
0x1000   : > { %p2228_p8 = pneg %p2227_p7 }
0x1001   : > { %p2234_p13 = por %p2233_p12, %p2232_p11 }
0x1003   : > { %p2235_p0 = pnand %p2234_p13, %p2228_p8 }
0x1005   : > { %2238 = shalt.err (!%p2235_p0)
}
0x1006   : > { %2129 = dma.vmem_to_hbm [thread:$0]  (%p2414_p5), %s2720_s19, 128, %s2718_s24, %s1747_s23  }
0x1007 PF: > { %p2135_p1 = scmp.ge.s32.totalorder %s2273_s30, 2  ;;  %s1772_s4 = sand.u32 1, %s2261_s27  }
0x1008   : > { %s1773_s25 = scalar_lea.sflag [#allocation3], %s1772_s4 }
0x1009   : > { %p2132_p2 = pnand %p2135_p1, %p2418_p6 }
0x100b   : > { %2256 = dma.done.wait (!%p2132_p2), %s1773_s25, 128  }
0x100c   : > { %2258 = vsyncadd (!%p2132_p2), %s1773_s25, 4294967168  ;;  %s2803_s30 = sld [smem:[#allocation6_spill]]  ;;  %s2804_s20 = sld [smem:[#allocation5_spill]] }
0x100d   : > { %s2805_s29 = sld [smem:[#allocation7_spill]]  ;;  %s2806_s27 = smov %s2265_s28 }
0x1012   : > { %p28_p3 = scmp.ge.s32.totalorder %s2803_s30, 4   ;;  %s2807_s28 = smov %s2804_s20 }
0x1014   :  { %30 = sbr.rel (!%p28_p3) target bundleno = 9 (0x9), region = 135 }
0x101b   :  { %1778 = vsyncpa [#allocation3], 1 }
0x101c   :  { %1780 = vsyncpa [#allocation3 + $0x1], 1 }

</bundles_post_ra>
